<compile_context>
chip_gen: v7x
topology: tpu7x:2x2x1
jax: 0.10.0
libtpu: 0.0.40
codegen_flags: <defaults>
</compile_context>

<pallas_src>
import functools

import jax
import jax.numpy as jnp
from jax.experimental import pallas as pl
from jax.experimental.pallas import tpu as pltpu

IGNORE_INDEX = -100


def _ce_kernel(tgt_ref, wt_ref, pred_ref, loss_ref):
    """One row-tile of weighted NLL; writes this tile's partial sum."""
    logits = pred_ref[...].astype(jnp.float32)          # (TILE, V)
    tgt = tgt_ref[...]                                   # (TILE, 1) int32
    w_t = wt_ref[...]                                    # (TILE, 1) f32, 0 for ignored/padded rows

    valid = tgt != IGNORE_INDEX                          # (TILE, 1)
    # Clamp ignored / out-of-bounds tail rows BEFORE the LSE so garbage logits
    # in a partial last block can never produce inf/NaN (0 * inf = NaN would
    # not be masked by the later multiply).
    logits = jnp.where(valid, logits, 0.0)
    safe_tgt = jnp.where(valid, tgt, 0)

    # numerically-stable log-sum-exp over the vocab (lane) axis
    m = jnp.max(logits, axis=-1, keepdims=True)          # (TILE, 1)
    lse = m + jnp.log(jnp.sum(jnp.exp(logits - m), axis=-1, keepdims=True))

    # gather logit[target] via a broadcast one-hot compare (no TPU gather);
    # iota is (1, V), broadcast against the (TILE, 1) targets.
    col = jax.lax.broadcasted_iota(jnp.int32, (1, logits.shape[-1]), 1)
    onehot = col == safe_tgt                              # (TILE, V)
    logit_t = jnp.sum(jnp.where(onehot, logits, 0.0), axis=-1, keepdims=True)

    loss_rows = w_t * (lse - logit_t)                     # (TILE, 1)
    loss_ref[...] = jnp.zeros_like(loss_ref) + jnp.sum(loss_rows)


def _choose_row_tile(n_rows, vocab, pred_itemsize):
    """Largest 8-multiple row tile that fits a conservative VMEM budget."""
    budget = 20 * 1024 * 1024  # headroom under the 32 MiB scoped limit (v7x-safe)
    # ~ double-buffered pred block + ~5 live (TILE, V) f32 temporaries
    bytes_per_row = 2 * vocab * pred_itemsize + 5 * vocab * 4
    cap = max(8, min(1024, (budget // bytes_per_row) // 8 * 8))
    n_up = ((n_rows + 7) // 8) * 8
    return int(min(cap, n_up))


def _weighted_nll_sum(targets_2d, w_tok_2d, pred_2d, tile):
    """targets_2d/w_tok_2d: (n_pad, 1); pred_2d: (n, V) native dtype."""
    n, v = pred_2d.shape
    assert tile % 8 == 0
    grid = pl.cdiv(n, tile)

    # TODO(synk): for very large vocabularies (>=16K), add a second grid axis
    # over V with an online (flash-style) LSE so row tiles can stay large.
    loss_parts = pl.pallas_call(
        _ce_kernel,
        out_shape=jax.ShapeDtypeStruct((grid, 1, 1), jnp.float32),
        grid_spec=pltpu.PrefetchScalarGridSpec(
            num_scalar_prefetch=0,
            grid=(grid,),
            in_specs=[
                pl.BlockSpec((tile, 1), lambda i: (i, 0)),   # targets
                pl.BlockSpec((tile, 1), lambda i: (i, 0)),   # per-token weights
                pl.BlockSpec((tile, v), lambda i: (i, 0)),   # logits (native dtype)
            ],
            out_specs=pl.BlockSpec((1, 1, 1), lambda i: (i, 0, 0)),
        ),
        compiler_params=pltpu.CompilerParams(
            dimension_semantics=("parallel",),
            vmem_limit_bytes=32 * 1024 * 1024),
    )(targets_2d, w_tok_2d, pred_2d)
    return jnp.sum(loss_parts)


@functools.partial(jax.jit, static_argnames=("num_structure_token", "row_tile"))
def seq2seq_loss(tgt_tokens, tgt_seq_len, pred, *, num_structure_token,
                 eos_coef=1.0, tag_coef=1.0, triple_coef=1.0, row_tile=None):
    """JAX/Pallas port of Seq2SeqLoss.forward.

    tgt_tokens : (B, L)   int32
    tgt_seq_len: (B,)     int32
    pred       : (B, L-1, V) logits (f32 or bf16)
    returns scalar weighted-mean cross-entropy (ignore_index = -100).
    """
    b, t, v = pred.shape

    # ---- glue: shift targets, build length mask (masked_fill with -100) ----
    seq_len = tgt_seq_len - 1                               # (B,)
    pos = jnp.arange(t, dtype=seq_len.dtype)[None, :]       # (1, T)
    mask = pos >= seq_len[:, None]                          # (B, T)
    targets = jnp.where(mask, IGNORE_INDEX, tgt_tokens[:, 1:]).astype(jnp.int32)

    # ---- glue: per-class weight vector + per-token weight gather (in XLA) ----
    w = jnp.ones((v,), jnp.float32)
    w = w.at[0].set(eos_coef)
    w = w.at[1:num_structure_token].set(tag_coef)
    w = w.at[num_structure_token:].set(triple_coef)

    valid = targets != IGNORE_INDEX
    safe = jnp.where(valid, targets, 0)
    w_tok = jnp.where(valid, w[safe], 0.0).astype(jnp.float32)   # (B, T)
    weight_sum = jnp.sum(w_tok)    # cross_entropy 'mean' denominator

    # ---- flatten rows; pad ONLY the tiny per-row vectors to a tile multiple ----
    n = b * t
    tile = row_tile if row_tile is not None else _choose_row_tile(
        n, v, pred.dtype.itemsize)
    grid = pl.cdiv(n, tile)
    n_pad = grid * tile

    pred_2d = pred.reshape(n, v)                        # native dtype, no copy/pad
    targets_2d = targets.reshape(n, 1)
    w_tok_2d = w_tok.reshape(n, 1)
    if n_pad != n:
        targets_2d = jnp.pad(targets_2d, ((0, n_pad - n), (0, 0)),
                             constant_values=IGNORE_INDEX)
        w_tok_2d = jnp.pad(w_tok_2d, ((0, n_pad - n), (0, 0)))

    loss_sum = _weighted_nll_sum(targets_2d, w_tok_2d, pred_2d, tile)
    return loss_sum / weight_sum


def _reference_loss(tgt_tokens, tgt_seq_len, pred, num_structure_token,
                    eos_coef, tag_coef, triple_coef):
    """Pure-JAX reference mirroring the PyTorch semantics."""
    b, t, v = pred.shape
    seq_len = tgt_seq_len - 1
    pos = jnp.arange(t)[None, :]
    mask = pos >= seq_len[:, None]
    targets = jnp.where(mask, IGNORE_INDEX, tgt_tokens[:, 1:])

    w = jnp.ones((v,), jnp.float32)
    w = w.at[0].set(eos_coef)
    w = w.at[1:num_structure_token].set(tag_coef)
    w = w.at[num_structure_token:].set(triple_coef)

    logp = jax.nn.log_softmax(pred.astype(jnp.float32), axis=-1)
    valid = targets != IGNORE_INDEX
    safe = jnp.where(valid, targets, 0)
    nll = -jnp.take_along_axis(logp, safe[..., None], axis=-1)[..., 0]
    w_t = w[safe]
    num = jnp.sum(jnp.where(valid, w_t * nll, 0.0))
    den = jnp.sum(jnp.where(valid, w_t, 0.0))
    return num / den


if __name__ == "__main__":
    key = jax.random.PRNGKey(0)
    k1, k2, k3, k4 = jax.random.split(key, 4)

    # --- test 1: small f32 case, auto tile (single block) --------------------
    B, L, V = 2, 9, 128
    NST = 6
    tgt_tokens = jax.random.randint(k1, (B, L), 0, V, dtype=jnp.int32)
    tgt_seq_len = jnp.array([9, 6], dtype=jnp.int32)
    pred = jax.random.normal(k2, (B, L - 1, V), dtype=jnp.float32)

    loss = seq2seq_loss(tgt_tokens, tgt_seq_len, pred, num_structure_token=NST,
                        eos_coef=0.5, tag_coef=2.0, triple_coef=1.5)
    loss = jax.block_until_ready(loss)
    ref = _reference_loss(tgt_tokens, tgt_seq_len, pred, NST, 0.5, 2.0, 1.5)
    assert jnp.isfinite(loss)
    assert abs(float(loss) - float(ref)) < 1e-4, (float(loss), float(ref))

    # --- test 2: bf16 logits, multi-block grid with a partial tail block -----
    B2, L2, V2 = 3, 12, 256
    tgt_tokens2 = jax.random.randint(k3, (B2, L2), 0, V2, dtype=jnp.int32)
    tgt_seq_len2 = jnp.array([12, 7, 2], dtype=jnp.int32)
    pred2 = jax.random.normal(
        k4, (B2, L2 - 1, V2), dtype=jnp.float32).astype(jnp.bfloat16)

    loss2 = seq2seq_loss(tgt_tokens2, tgt_seq_len2, pred2, num_structure_token=NST,
                         eos_coef=0.3, tag_coef=1.7, triple_coef=0.9, row_tile=8)
    loss2 = jax.block_until_ready(loss2)
    ref2 = _reference_loss(tgt_tokens2, tgt_seq_len2, pred2, NST, 0.3, 1.7, 0.9)
    assert jnp.isfinite(loss2)
    assert abs(float(loss2) - float(ref2)) < 2e-3 * max(1.0, abs(float(ref2))), (
        float(loss2), float(ref2))

    print("KERNEL_OK")
</pallas_src>

<mosaic_0001>
module attributes {stable_mosaic.version = 11 : i64} {
  func.func @_ce_kernel(%arg0: i32, %arg1: memref<16x1xi32, #tpu.memory_space<vmem>>, %arg2: memref<16x1xf32, #tpu.memory_space<vmem>>, %arg3: memref<16x128xf32, #tpu.memory_space<vmem>>, %arg4: memref<1x1x1xf32, #tpu.memory_space<vmem>>) attributes {dimension_semantics = [#tpu.dimension_semantics<parallel>], iteration_bounds = array<i64: 1>, scalar_prefetch = 0 : i64, scratch_operands = 0 : i64, tpu.core_type = #tpu.core_type<tc>, window_params = [{transform_indices = @transform_0, window_bounds = array<i64: 16, 1>}, {transform_indices = @transform_1, window_bounds = array<i64: 16, 1>}, {transform_indices = @transform_2, window_bounds = array<i64: 16, 128>}, {transform_indices = @transform_3, window_bounds = array<i64: 1, 1, 1>}]} {
    %c0 = arith.constant 0 : index
    %c0_0 = arith.constant 0 : index
    %0 = vector.load %arg3[%c0, %c0_0] : memref<16x128xf32, #tpu.memory_space<vmem>>, vector<16x128xf32>
    %c0_1 = arith.constant 0 : index
    %c0_2 = arith.constant 0 : index
    %1 = vector.load %arg1[%c0_1, %c0_2] : memref<16x1xi32, #tpu.memory_space<vmem>>, vector<16x1xi32>
    %c0_3 = arith.constant 0 : index
    %c0_4 = arith.constant 0 : index
    %2 = vector.load %arg2[%c0_3, %c0_4] : memref<16x1xf32, #tpu.memory_space<vmem>>, vector<16x1xf32>
    %c-100_i32 = arith.constant -100 : i32
    %3 = vector.broadcast %c-100_i32 : i32 to vector<16x1xi32>
    %4 = arith.cmpi ne, %1, %3 : vector<16x1xi32>
    %cst = arith.constant 0.000000e+00 : f32
    %5 = vector.shape_cast %4 : vector<16x1xi1> to vector<16x1xi1>
    %6 = vector.broadcast %5 : vector<16x1xi1> to vector<16x128xi1>
    %7 = vector.broadcast %cst : f32 to vector<16x128xf32>
    %8 = arith.select %6, %0, %7 : vector<16x128xi1>, vector<16x128xf32>
    %c0_i32 = arith.constant 0 : i32
    %9 = vector.broadcast %c0_i32 : i32 to vector<16x1xi32>
    %10 = arith.select %4, %1, %9 : vector<16x1xi1>, vector<16x1xi32>
    %cst_5 = arith.constant dense<0xFF800000> : vector<16xf32>
    %11 = vector.multi_reduction <maximumf>, %8, %cst_5 [1] : vector<16x128xf32> to vector<16xf32>
    %12 = vector.shape_cast %11 : vector<16xf32> to vector<16x1xf32>
    %13 = vector.broadcast %12 : vector<16x1xf32> to vector<16x128xf32>
    %14 = arith.subf %8, %13 : vector<16x128xf32>
    %15 = math.exp %14 : vector<16x128xf32>
    %cst_6 = arith.constant dense<0.000000e+00> : vector<16xf32>
    %16 = vector.multi_reduction <add>, %15, %cst_6 [1] : vector<16x128xf32> to vector<16xf32>
    %17 = vector.shape_cast %16 : vector<16xf32> to vector<16x1xf32>
    %18 = math.log %17 : vector<16x1xf32>
    %19 = arith.addf %12, %18 : vector<16x1xf32>
    %20 = tpu.iota {dimensions = array<i32: 1>} : vector<1x128xi32>
    %21 = vector.broadcast %20 : vector<1x128xi32> to vector<16x128xi32>
    %22 = vector.broadcast %10 : vector<16x1xi32> to vector<16x128xi32>
    %23 = arith.cmpi eq, %21, %22 : vector<16x128xi32>
    %cst_7 = arith.constant 0.000000e+00 : f32
    %24 = vector.broadcast %cst_7 : f32 to vector<16x128xf32>
    %25 = arith.select %23, %8, %24 : vector<16x128xi1>, vector<16x128xf32>
    %cst_8 = arith.constant dense<0.000000e+00> : vector<16xf32>
    %26 = vector.multi_reduction <add>, %25, %cst_8 [1] : vector<16x128xf32> to vector<16xf32>
    %27 = vector.shape_cast %26 : vector<16xf32> to vector<16x1xf32>
    %28 = arith.subf %19, %27 : vector<16x1xf32>
    %29 = arith.mulf %2, %28 : vector<16x1xf32>
    %cst_9 = arith.constant 0.000000e+00 : f32
    %30 = vector.broadcast %cst_9 : f32 to vector<1x1x1xf32>
    %31 = vector.shape_cast %29 : vector<16x1xf32> to vector<1x16x1xf32>
    %cst_10 = arith.constant dense<0.000000e+00> : vector<1xf32>
    %32 = vector.multi_reduction <add>, %31, %cst_10 [1, 2] : vector<1x16x1xf32> to vector<1xf32>
    %33 = vector.shape_cast %32 : vector<1xf32> to vector<1x1x1xf32>
    %34 = vector.extract %33[0, 0, 0] : f32 from vector<1x1x1xf32>
    %35 = vector.broadcast %34 : f32 to vector<1x1x1xf32>
    %36 = arith.addf %30, %35 : vector<1x1x1xf32>
    %c0_11 = arith.constant 0 : index
    %c0_12 = arith.constant 0 : index
    %c0_13 = arith.constant 0 : index
    %37 = vector.load %arg4[%c0_11, %c0_12, %c0_13] : memref<1x1x1xf32, #tpu.memory_space<vmem>>, vector<1x1x1xf32>
    tpu.vector_store %arg4[%c0_11, %c0_12, %c0_13], %36 {strides = array<i32>} : memref<1x1x1xf32, #tpu.memory_space<vmem>>, vector<1x1x1xf32>,
    return
  }
  func.func @transform_0(%arg0: i32) -> (i32, i32) {
    %c0_i32 = arith.constant 0 : i32
    %c0_i32_0 = arith.constant 0 : i32
    return %arg0, %c0_i32 : i32, i32
  }
  func.func @transform_1(%arg0: i32) -> (i32, i32) {
    %c0_i32 = arith.constant 0 : i32
    %c0_i32_0 = arith.constant 0 : i32
    return %arg0, %c0_i32 : i32, i32
  }
  func.func @transform_2(%arg0: i32) -> (i32, i32) {
    %c0_i32 = arith.constant 0 : i32
    %c0_i32_0 = arith.constant 0 : i32
    return %arg0, %c0_i32 : i32, i32
  }
  func.func @transform_3(%arg0: i32) -> (i32, i32, i32) {
    %c0_i32 = arith.constant 0 : i32
    %c0_i32_0 = arith.constant 0 : i32
    %c0_i32_1 = arith.constant 0 : i32
    return %arg0, %c0_i32, %c0_i32_0 : i32, i32, i32
  }
}

</mosaic_0001>

<bundles_post_ra>
// kernel: seq2seq_loss.1
= control target key start
LH: loop header
LB: loop body
LE: loop exit
PB: predicated region body
PF: predicated region fallthrough
CT: control target
= control target key end

     0   :  { %s198_s0 = inlined_call_operand.vmem [shape: s32[16,1], index: 0, kind: input, shape index: {}]   ;;  %s199_s1 = inlined_call_operand.vmem [shape: f32[16,1], index: 1, kind: input, shape index: {}]   ;;  %s200_s2 = inlined_call_operand.vmem [shape: f32[16,128], index: 2, kind: input, shape index: {}]   ;;  %s201_s3 = inlined_call_operand.hbm [shape: f32[1,1,1], index: 3, kind: output, shape index: {}]  }
   0x1   :  { %v17_v0 = vld [vmem:[%s198_s0] sm:$0xff]  ;;  %v18_v1 = vld [vmem:[%s198_s0 + $0x8] sm:$0xff] }
   0x2   :  { %8 = vsyncpa [#allocation3], 0  ;;  %v146_v2 = vmov 0   ;;  %vm21_vm0 = vcmp.ne.s32.totalorder %v17_v0, 4294967196  ;;  %vm22_vm1 = vcmp.ne.s32.totalorder %v18_v1, 4294967196  ;;  %v15_v7 = vld [vmem:[%s200_s2] sm:$0xff]  ;;  %v57_v19 = vlaneseq }
   0x3   :  { %112 = vset.pattern.permute.xlu0 %v146_v2  ;;  %113 = vset.pattern.permute.xlu1 %v146_v2  ;;  %v23_v3 = vsel %vm21_vm0, 1, %v146_v2  ;;  %v24_v4 = vsel %vm22_vm1, 1, %v146_v2  ;;  %v35_v5 = vsel %vm21_vm0, %v17_v0, 0  ;;  %v36_v6 = vsel %vm22_vm1, %v18_v1, 0  ;;  %v16_v10 = vld [vmem:[%s200_s2 + $0x8] sm:$0xff]  ;;  %v19_v36 = vld [vmem:[%s199_s1] sm:$0xff] }
   0x4   :  { %26 = vperm.xlu0 %112, %v23_v3   ;;  %v58_v20 = vand.u32 127, %v57_v19  ;;  %v20_v38 = vld [vmem:[%s199_s1 + $0x8] sm:$0xff]  ;;  %vm77_vm6 = vcmask 7168   ;;  %s147_s22 = smov [#allocation2]   ;;  %vm92_vm7 = vcmask 0  }
   0x5   :  { %s100_s23 = sshll.u32 %s147_s22, 4  ;;  %s101_s23 = int_to_ptr.vmem [resolvable:$true] %s100_s23 }
   0x6   :  { %s122_s24 = scalar_lea.vmem %s101_s23, 16  ;;  %s126_s25 = scalar_lea.vmem %s101_s23, 32 }
   0x7   :  { %p123_p0 = scmp.ne.s32.totalorder %s101_s23, %s122_s24  ;;  %p127_p1 = scmp.lt.s32.totalorder %s101_s23, %s101_s23 }
   0x8   :  { %29 = vperm.xlu0 %112, %v24_v4   ;;  %p128_p2 = scmp.lt.s32.totalorder %s126_s25, %s122_s24 }
   0xa   :  { %p129_p3 = por %p128_p2, %p127_p1 }
   0xc   :  { %60 = vperm.xlu0 %112, %v35_v5   ;;  %p130_p4 = pnand %p129_p3, %p123_p0 }
  0x83   :  { %v27_v8 = vpop.permute.xlu0 %26 }
  0x84   :  { %vm31_vm2 = vcmp.eq.s32.totalorder %v27_v8, 1 }
  0x85   :  { %v33_v9 = vsel %vm31_vm2, %v15_v7, 0.0 }
  0x86   :  { %37 = vmax.xlane.f32.xlu1 %v33_v9 }
  0x87   :  { %v30_v11 = vpop.permute.xlu0 %29 }
  0x88   :  { %vm32_vm3 = vcmp.eq.s32.totalorder %v30_v11, 1 }
  0x89   :  { %v34_v12 = vsel %vm32_vm3, %v16_v10, 0.0 }
  0x8a   :  { %39 = vmax.xlane.f32.xlu1 %v34_v12 }
  0x8b   :  { %v61_v21 = vpop.permute.xlu0 %60 }
  0x8c   :  { %vm65_vm4 = vcmp.eq.s32.totalorder %v58_v20, %v61_v21 }
  0x8d   :  { %v67_v25 = vsel %vm65_vm4, %v33_v9, 0.0 }
  0x9b   :  { %63 = vperm.xlu1 %113, %v36_v6  }
 0x113   :  { %v38_v13 = vpop.xlane.xlu1 %37 }
 0x114   :  { %v41_v14 = vsub.f32 %v33_v9, %v38_v13 }
 0x116   :  { %v43_v15 = vmul.f32 1.442695, %v41_v14 }
 0x117   :  { %v40_v16 = vpop.xlane.xlu1 %39 }
 0x118   :  { %114 = vpow2.f32 %v43_v15  ;;  %v42_v17 = vsub.f32 %v34_v12, %v40_v16 }
 0x11a   :  { %v45_v18 = vmul.f32 1.442695, %v42_v17 }
 0x11b   :  { %v64_v23 = vpop.permute.xlu1 %63 }
 0x11c   :  { %116 = vpow2.f32 %v45_v18  ;;  %vm66_vm5 = vcmp.eq.s32.totalorder %v58_v20, %v64_v23 }
 0x11d   :  { %v68_v26 = vsel %vm66_vm5, %v34_v12, 0.0 }
 0x122   :  { %v115_v22 = vpop.eup %114 }
 0x123   :  { %47 = vadd.xlane.f32.xlu0 %v115_v22 }
 0x126   :  { %v117_v24 = vpop.eup %116 }
 0x127   :  { %49 = vadd.xlane.f32.xlu1 %v117_v24  ;;  %69 = vadd.xlane.f32.xlu0 %v67_v25 }
 0x12b   :  { %71 = vadd.xlane.f32.xlu0 %v68_v26 }
 0x1b0   :  { %v48_v27 = vpop.xlane.xlu0 %47 }
 0x1b1   :  { %118 = vlog2.f32 %v48_v27 }
 0x1b4   :  { %v50_v28 = vpop.xlane.xlu1 %49  ;;  %v70_v31 = vpop.xlane.xlu0 %69 }
 0x1b5   :  { %120 = vlog2.f32 %v50_v28 }
 0x1b8   :  { %v72_v39 = vpop.xlane.xlu0 %71 }
 0x1bb   :  { %v119_v29 = vpop.eup %118 }
 0x1bc   :  { %v52_v30 = vmul.f32 0.6931472, %v119_v29 }
 0x1be   :  { %v55_v32 = vadd.f32 %v52_v30, %v38_v13 }
 0x1bf   :  { %v121_v33 = vpop.eup %120 }
 0x1c0   :  { %v54_v34 = vmul.f32 0.6931472, %v121_v33  ;;  %v73_v35 = vsub.f32 %v55_v32, %v70_v31 }
 0x1c2   :  { %v56_v37 = vadd.f32 %v54_v34, %v40_v16  ;;  %v75_v40 = vmul.f32 %v73_v35, %v19_v36 }
 0x1c4   :  { %v74_v41 = vsub.f32 %v56_v37, %v72_v39  ;;  %v78_v43 = vsel %vm77_vm6, %v75_v40, 0.0 }
 0x1c6   :  { %v76_v42 = vmul.f32 %v74_v41, %v20_v38 }
 0x1c8   :  { %v79_v44 = vsel %vm77_vm6, %v76_v42, 0.0 }
 0x1c9   :  { %v80_v45 = vadd.f32 %v79_v44, %v78_v43 }
 0x1cb   :  { %81 = vadd.xlane.f32.xlu0 %v80_v45 }
 0x258   :  { %v82_v46 = vpop.xlane.xlu0 %81 }
 0x259   :  { %v83_v47 = vrot.slane %v82_v46, 4 }
 0x25b   :  { %v84_v48 = vadd.f32 %v83_v47, %v82_v46 }
 0x25d   :  { %v85_v49 = vrot.slane %v84_v48, 2 }
 0x25f   :  { %v86_v50 = vadd.f32 %v85_v49, %v84_v48 }
 0x261   :  { %v87_v51 = vrot.slane %v86_v50, 1 }
 0x263   :  { %v88_v52 = vadd.f32 %v87_v51, %v86_v50 }
 0x265   :  { %108 = vpush %v88_v52 }
 0x296   :  { %s109_s1 = spop %108 }
 0x297   :  { %v90_v53 = vstv %s109_s1 }
 0x298   :  { %93 = vst.msk [vmem:[#allocation2] sm:$0x1] %vm92_vm7, %v90_v53 }
 0x299   :  { %133 = shalt.err (!%p130_p4)
}
 0x29a   :  { %s134_s28 = scalar_lea.hbm %s201_s3, 16 }
 0x29b   :  { %p135_p5 = scmp.ne.s32.totalorder %s201_s3, %s134_s28  ;;  %p138_p6 = scmp.lt.u32.totalorder %s134_s28, %s201_s3 }
 0x29d   :  { %p140_p7 = pnand %p138_p6, %p135_p5 }
 0x29f   :  { %143 = shalt.err (!%p140_p7)
}
 0x2a0   :  { %103 = dma.vmem_to_hbm [thread:$0]  %s101_s23, 16, %s201_s3, [#allocation3]  }
 0x2a1   :  { %144 = dma.done.wait [#allocation3], 16  }
 0x2a2   :  { %145 = vsyncadd [#allocation3], 4294967280 }
 0x2a3   :  { %107 = vsyncpa [#allocation3], 1 }

</bundles_post_ra>
